<compile_context>
chip_gen: v7x
topology: tpu7x:2x2x1
jax: 0.10.0
libtpu: 0.0.40
codegen_flags: <defaults>
</compile_context>

<pallas_src>
import functools

import jax
import jax.numpy as jnp
from jax.experimental import pallas as pl
from jax.experimental.pallas import tpu as pltpu

DROPOUT_P = 0.2


def mha_kernel(x_ref, wq_ref, wk_ref, wv_ref, wp_ref, bp_ref, *rest,
               train, scale, p):
    # x_ref : (T, C)     wq/wk/wv_ref : (C, hs)     wp_ref : (hs, C)
    # bp_ref: (1, C)     o_ref : (T, C)             acc_ref: (T, C) f32 scratch
    if train:
        attn_u_ref, out_u_ref, o_ref, acc_ref = rest
    else:
        o_ref, acc_ref = rest

    h = pl.program_id(1)

    @pl.when(h == 0)
    def _init():
        acc_ref[...] = jnp.zeros_like(acc_ref)

    xb = x_ref[...].astype(jnp.bfloat16)
    q = jnp.dot(xb, wq_ref[...].astype(jnp.bfloat16),
                preferred_element_type=jnp.float32)           # (T, hs)
    k = jnp.dot(xb, wk_ref[...].astype(jnp.bfloat16),
                preferred_element_type=jnp.float32)           # (T, hs)
    v = jnp.dot(xb, wv_ref[...].astype(jnp.bfloat16),
                preferred_element_type=jnp.float32)           # (T, hs)

    # scores = q @ k^T * C**-0.5  (contract the head dim, no explicit transpose)
    s = jax.lax.dot_general(
        q.astype(jnp.bfloat16), k.astype(jnp.bfloat16),
        (((1,), (1,)), ((), ())),
        preferred_element_type=jnp.float32) * scale           # (T, T)

    # causal mask (tril)
    T = s.shape[0]
    row = jax.lax.broadcasted_iota(jnp.int32, (T, T), 0)
    col = jax.lax.broadcasted_iota(jnp.int32, (T, T), 1)
    s = jnp.where(col <= row, s, -jnp.inf)

    # softmax along the key axis
    m = jnp.max(s, axis=-1, keepdims=True)
    e = jnp.exp(s - m)
    attn = e / jnp.sum(e, axis=-1, keepdims=True)

    if train:  # dropout on attention weights (keep if u >= p, scale by 1/(1-p))
        attn = jnp.where(attn_u_ref[...] >= p, attn * (1.0 / (1.0 - p)), 0.0)

    o_h = jnp.dot(attn.astype(jnp.bfloat16), v.astype(jnp.bfloat16),
                  preferred_element_type=jnp.float32)         # (T, hs)

    # Fold this head straight into the output projection; the concat is implicit.
    acc_ref[...] += jnp.dot(o_h.astype(jnp.bfloat16),
                            wp_ref[...].astype(jnp.bfloat16),
                            preferred_element_type=jnp.float32)  # (T, C)

    @pl.when(h == pl.num_programs(1) - 1)
    def _finish():
        y = acc_ref[...] + bp_ref[...]
        if train:  # dropout on projection output
            y = jnp.where(out_u_ref[...] >= p, y * (1.0 / (1.0 - p)), 0.0)
        o_ref[...] = y.astype(o_ref.dtype)


def multi_head_attention(x, wq, wk, wv, wp, bp, *, train=False,
                         dropout_key=None, p=DROPOUT_P):
    """x: (B, T, C). wq/wk/wv: (nh, C, hs). wp: (nh, hs, C) = proj matrix split
    by head along its input dim. bp: (C,). Returns (B, T, C)."""
    B, T, C = x.shape
    nh, _, hs = wq.shape
    assert nh * hs == C, "n_head * head_size must equal n_embd"
    scale = float(C) ** -0.5
    bp2 = bp.reshape(1, C)

    args = [x, wq, wk, wv, wp, bp2]
    in_specs = [
        pl.BlockSpec((None, T, C), lambda b, h: (b, 0, 0)),    # x     (per batch)
        pl.BlockSpec((None, C, hs), lambda b, h: (h, 0, 0)),   # wq    (per head)
        pl.BlockSpec((None, C, hs), lambda b, h: (h, 0, 0)),   # wk
        pl.BlockSpec((None, C, hs), lambda b, h: (h, 0, 0)),   # wv
        pl.BlockSpec((None, hs, C), lambda b, h: (h, 0, 0)),   # wp slice
        pl.BlockSpec((1, C), lambda b, h: (0, 0)),             # proj bias
    ]
    bytes_acc = 4 * (B * T * C + 4 * nh * C * hs + C + B * T * C)

    if train:
        assert dropout_key is not None
        ka, ko = jax.random.split(dropout_key)
        attn_u = jax.random.uniform(ka, (B, nh, T, T), jnp.float32)
        out_u = jax.random.uniform(ko, (B, T, C), jnp.float32)
        args += [attn_u, out_u]
        in_specs += [
            pl.BlockSpec((None, None, T, T), lambda b, h: (b, h, 0, 0)),
            pl.BlockSpec((None, T, C), lambda b, h: (b, 0, 0)),
        ]
        bytes_acc += 4 * (B * nh * T * T + B * T * C)

    cost = pl.CostEstimate(
        flops=2 * B * nh * (3 * T * C * hs + 2 * T * T * hs + T * hs * C),
        transcendentals=B * nh * T * T,
        bytes_accessed=bytes_acc)

    kernel = functools.partial(mha_kernel, train=train, scale=scale, p=p)

    out = pl.pallas_call(
        kernel,
        out_shape=jax.ShapeDtypeStruct((B, T, C), x.dtype),
        grid=(B, nh),
        in_specs=in_specs,
        out_specs=pl.BlockSpec((None, T, C), lambda b, h: (b, 0, 0)),
        scratch_shapes=[pltpu.VMEM((T, C), jnp.float32)],
        compiler_params=pltpu.CompilerParams(
            # batch axis independent -> parallel (megacore on v7x);
            # head axis carries the projection accumulator -> arbitrary.
            dimension_semantics=("parallel", "arbitrary"),
        ),
        cost_estimate=cost,
    )(*args)
    return out


def init_params(key, n_embd, n_head):
    """nn.Linear-style init (uniform +-1/sqrt(fan_in)); weights pre-transposed."""
    hs = n_embd // n_head
    kq, kk, kv, kp, kb = jax.random.split(key, 5)
    lim = 1.0 / jnp.sqrt(n_embd)
    wq = jax.random.uniform(kq, (n_head, n_embd, hs), jnp.float32, -lim, lim)
    wk = jax.random.uniform(kk, (n_head, n_embd, hs), jnp.float32, -lim, lim)
    wv = jax.random.uniform(kv, (n_head, n_embd, hs), jnp.float32, -lim, lim)
    wp_full = jax.random.uniform(kp, (n_embd, n_embd), jnp.float32, -lim, lim)
    bp = jax.random.uniform(kb, (n_embd,), jnp.float32, -lim, lim)
    wp = wp_full.reshape(n_head, hs, n_embd)  # per-head row-slices of proj matrix
    return wq, wk, wv, wp, bp


def ref_mha(x, wq, wk, wv, wp, bp):
    """Pure-JAX f32 reference matching the PyTorch forward (eval mode)."""
    B, T, C = x.shape
    q = jnp.einsum('btc,hcs->bhts', x, wq)
    k = jnp.einsum('btc,hcs->bhts', x, wk)
    v = jnp.einsum('btc,hcs->bhts', x, wv)
    s = jnp.einsum('bhts,bhus->bhtu', q, k) * (float(C) ** -0.5)
    mask = jnp.tril(jnp.ones((T, T), dtype=bool))
    s = jnp.where(mask, s, -jnp.inf)
    p = jax.nn.softmax(s, axis=-1)
    o = jnp.einsum('bhtu,bhus->bhts', p, v)                   # (B, nh, T, hs)
    o = jnp.transpose(o, (0, 2, 1, 3)).reshape(B, T, C)        # concat heads
    return o @ wp.reshape(C, C) + bp


if __name__ == "__main__":
    # Small shapes consistent with the module: n_embd = n_head * head_size,
    # seq <= block_size, scale = n_embd ** -0.5.
    batch, seq = 2, 8
    n_head, head_size = 8, 16
    n_embd = n_head * head_size  # 128

    key = jax.random.PRNGKey(0)
    kx, kp, kd = jax.random.split(key, 3)
    x = jax.random.normal(kx, (batch, seq, n_embd), jnp.float32)
    wq, wk, wv, wp, bp = init_params(kp, n_embd, n_head)

    # Eval mode (dropout = identity): compare against a pure-JAX f32 reference.
    out_eval = multi_head_attention(x, wq, wk, wv, wp, bp, train=False)
    out_eval = jax.block_until_ready(out_eval)
    ref = ref_mha(x, wq, wk, wv, wp, bp)
    assert out_eval.shape == (batch, seq, n_embd)
    # bf16 MXU operands with f32 accumulation -> loosened tolerance vs f32 ref.
    assert jnp.allclose(out_eval, ref, atol=3e-2, rtol=3e-2), "eval-mode mismatch"

    # Train mode: dropout applied in-kernel on attention weights and projection output.
    out_train = multi_head_attention(x, wq, wk, wv, wp, bp, train=True,
                                     dropout_key=kd)
    out_train = jax.block_until_ready(out_train)
    assert out_train.shape == x.shape
    assert bool(jnp.all(jnp.isfinite(out_train)))

    print("KERNEL_OK")
</pallas_src>

<mosaic_0001>
module attributes {stable_mosaic.version = 11 : i64} {
  func.func @mha_kernel(%arg0: i32, %arg1: i32, %arg2: memref<1x8x128xf32, #tpu.memory_space<vmem>>, %arg3: memref<1x128x16xf32, #tpu.memory_space<vmem>>, %arg4: memref<1x128x16xf32, #tpu.memory_space<vmem>>, %arg5: memref<1x128x16xf32, #tpu.memory_space<vmem>>, %arg6: memref<1x16x128xf32, #tpu.memory_space<vmem>>, %arg7: memref<1x128xf32, #tpu.memory_space<vmem>>, %arg8: memref<1x8x128xf32, #tpu.memory_space<vmem>>, %arg9: memref<8x128xf32, #tpu.memory_space<vmem>>) attributes {dimension_semantics = [#tpu.dimension_semantics<parallel>, #tpu.dimension_semantics<arbitrary>], iteration_bounds = array<i64: 2, 8>, scalar_prefetch = 0 : i64, scratch_operands = 1 : i64, tpu.core_type = #tpu.core_type<tc>, window_params = [{transform_indices = @transform_0, window_bounds = array<i64: 1, 8, 128>}, {transform_indices = @transform_1, window_bounds = array<i64: 1, 128, 16>}, {transform_indices = @transform_2, window_bounds = array<i64: 1, 128, 16>}, {transform_indices = @transform_3, window_bounds = array<i64: 1, 128, 16>}, {transform_indices = @transform_4, window_bounds = array<i64: 1, 16, 128>}, {pipeline_mode = #tpu.pipeline_mode<synchronous>, transform_indices = @transform_5, window_bounds = array<i64: 1, 128>}, {transform_indices = @transform_6, window_bounds = array<i64: 1, 8, 128>}]} {
    %c0_i32 = arith.constant 0 : i32
    %0 = arith.cmpi eq, %arg1, %c0_i32 : i32
    %1 = arith.extui %0 : i1 to i32
    %c0_i32_0 = arith.constant 0 : i32
    %2 = arith.cmpi ne, %1, %c0_i32_0 : i32
    scf.if %2 {
      %cst_29 = arith.constant 0.000000e+00 : f32
      %51 = vector.broadcast %cst_29 : f32 to vector<8x128xf32>
      %c0_30 = arith.constant 0 : index
      %c0_31 = arith.constant 0 : index
      %52 = vector.load %arg9[%c0_30, %c0_31] : memref<8x128xf32, #tpu.memory_space<vmem>>, vector<8x128xf32>
      tpu.vector_store %arg9[%c0_30, %c0_31], %51 {strides = array<i32>} : memref<8x128xf32, #tpu.memory_space<vmem>>, vector<8x128xf32>,
    } else {
    }
    %c0 = arith.constant 0 : index
    %c0_1 = arith.constant 0 : index
    %c0_2 = arith.constant 0 : index
    %3 = vector.load %arg2[%c0, %c0_1, %c0_2] : memref<1x8x128xf32, #tpu.memory_space<vmem>>, vector<1x8x128xf32>
    %4 = vector.shape_cast %3 : vector<1x8x128xf32> to vector<8x128xf32>
    %5 = arith.truncf %4 : vector<8x128xf32> to vector<8x128xbf16>
    %c0_3 = arith.constant 0 : index
    %c0_4 = arith.constant 0 : index
    %c0_5 = arith.constant 0 : index
    %6 = vector.load %arg3[%c0_3, %c0_4, %c0_5] : memref<1x128x16xf32, #tpu.memory_space<vmem>>, vector<1x128x16xf32>
    %7 = vector.shape_cast %6 : vector<1x128x16xf32> to vector<128x16xf32>
    %8 = arith.truncf %7 : vector<128x16xf32> to vector<128x16xbf16>
    %cst = arith.constant dense<0.000000e+00> : vector<8x16xf32>
    %9 = tpu.matmul %5, %8, %cst {dimension_numbers = #tpu.dot_dimension_numbers<[1], [0], [0], [1], [0, 0, 1, 1], [], []>} : vector<8x128xbf16>, vector<128x16xbf16>, vector<8x16xf32> -> vector<8x16xf32>
    %c0_6 = arith.constant 0 : index
    %c0_7 = arith.constant 0 : index
    %c0_8 = arith.constant 0 : index
    %10 = vector.load %arg4[%c0_6, %c0_7, %c0_8] : memref<1x128x16xf32, #tpu.memory_space<vmem>>, vector<1x128x16xf32>
    %11 = vector.shape_cast %10 : vector<1x128x16xf32> to vector<128x16xf32>
    %12 = arith.truncf %11 : vector<128x16xf32> to vector<128x16xbf16>
    %cst_9 = arith.constant dense<0.000000e+00> : vector<8x16xf32>
    %13 = tpu.matmul %5, %12, %cst_9 {dimension_numbers = #tpu.dot_dimension_numbers<[1], [0], [0], [1], [0, 0, 1, 1], [], []>} : vector<8x128xbf16>, vector<128x16xbf16>, vector<8x16xf32> -> vector<8x16xf32>
    %c0_10 = arith.constant 0 : index
    %c0_11 = arith.constant 0 : index
    %c0_12 = arith.constant 0 : index
    %14 = vector.load %arg5[%c0_10, %c0_11, %c0_12] : memref<1x128x16xf32, #tpu.memory_space<vmem>>, vector<1x128x16xf32>
    %15 = vector.shape_cast %14 : vector<1x128x16xf32> to vector<128x16xf32>
    %16 = arith.truncf %15 : vector<128x16xf32> to vector<128x16xbf16>
    %cst_13 = arith.constant dense<0.000000e+00> : vector<8x16xf32>
    %17 = tpu.matmul %5, %16, %cst_13 {dimension_numbers = #tpu.dot_dimension_numbers<[1], [0], [0], [1], [0, 0, 1, 1], [], []>} : vector<8x128xbf16>, vector<128x16xbf16>, vector<8x16xf32> -> vector<8x16xf32>
    %18 = arith.truncf %9 : vector<8x16xf32> to vector<8x16xbf16>
    %19 = arith.truncf %13 : vector<8x16xf32> to vector<8x16xbf16>
    %cst_14 = arith.constant dense<0.000000e+00> : vector<8x8xf32>
    %20 = tpu.matmul %18, %19, %cst_14 {dimension_numbers = #tpu.dot_dimension_numbers<[1], [1], [0], [0], [0, 0, 1, 0], [], []>} : vector<8x16xbf16>, vector<8x16xbf16>, vector<8x8xf32> -> vector<8x8xf32>
    %cst_15 = arith.constant 0.0883883461 : f32
    %21 = vector.broadcast %cst_15 : f32 to vector<8x8xf32>
    %22 = arith.mulf %20, %21 : vector<8x8xf32>
    %23 = tpu.iota {dimensions = array<i32: 0>} : vector<8x8xi32>
    %24 = tpu.iota {dimensions = array<i32: 1>} : vector<8x8xi32>
    %25 = arith.cmpi sle, %24, %23 : vector<8x8xi32>
    %cst_16 = arith.constant 0xFF800000 : f32
    %26 = vector.broadcast %cst_16 : f32 to vector<8x8xf32>
    %27 = arith.select %25, %22, %26 : vector<8x8xi1>, vector<8x8xf32>
    %cst_17 = arith.constant dense<0xFF800000> : vector<8xf32>
    %28 = vector.multi_reduction <maximumf>, %27, %cst_17 [1] : vector<8x8xf32> to vector<8xf32>
    %29 = vector.shape_cast %28 : vector<8xf32> to vector<8x1xf32>
    %30 = vector.broadcast %29 : vector<8x1xf32> to vector<8x8xf32>
    %31 = arith.subf %27, %30 : vector<8x8xf32>
    %32 = math.exp %31 : vector<8x8xf32>
    %cst_18 = arith.constant dense<0.000000e+00> : vector<8xf32>
    %33 = vector.multi_reduction <add>, %32, %cst_18 [1] : vector<8x8xf32> to vector<8xf32>
    %34 = vector.shape_cast %33 : vector<8xf32> to vector<8x1xf32>
    %35 = vector.broadcast %34 : vector<8x1xf32> to vector<8x8xf32>
    %36 = arith.divf %32, %35 : vector<8x8xf32>
    %37 = arith.truncf %36 : vector<8x8xf32> to vector<8x8xbf16>
    %38 = arith.truncf %17 : vector<8x16xf32> to vector<8x16xbf16>
    %cst_19 = arith.constant dense<0.000000e+00> : vector<8x16xf32>
    %39 = tpu.matmul %37, %38, %cst_19 {dimension_numbers = #tpu.dot_dimension_numbers<[1], [0], [0], [1], [0, 0, 1, 1], [], []>} : vector<8x8xbf16>, vector<8x16xbf16>, vector<8x16xf32> -> vector<8x16xf32>
    %c0_20 = arith.constant 0 : index
    %c0_21 = arith.constant 0 : index
    %40 = vector.load %arg9[%c0_20, %c0_21] : memref<8x128xf32, #tpu.memory_space<vmem>>, vector<8x128xf32>
    %41 = arith.truncf %39 : vector<8x16xf32> to vector<8x16xbf16>
    %c0_22 = arith.constant 0 : index
    %c0_23 = arith.constant 0 : index
    %c0_24 = arith.constant 0 : index
    %42 = vector.load %arg6[%c0_22, %c0_23, %c0_24] : memref<1x16x128xf32, #tpu.memory_space<vmem>>, vector<1x16x128xf32>
    %43 = vector.shape_cast %42 : vector<1x16x128xf32> to vector<16x128xf32>
    %44 = arith.truncf %43 : vector<16x128xf32> to vector<16x128xbf16>
    %cst_25 = arith.constant dense<0.000000e+00> : vector<8x128xf32>
    %45 = tpu.matmul %41, %44, %cst_25 {dimension_numbers = #tpu.dot_dimension_numbers<[1], [0], [0], [1], [0, 0, 1, 1], [], []>} : vector<8x16xbf16>, vector<16x128xbf16>, vector<8x128xf32> -> vector<8x128xf32>
    %46 = arith.addf %40, %45 : vector<8x128xf32>
    %c0_26 = arith.constant 0 : index
    %c0_27 = arith.constant 0 : index
    %47 = vector.load %arg9[%c0_26, %c0_27] : memref<8x128xf32, #tpu.memory_space<vmem>>, vector<8x128xf32>
    tpu.vector_store %arg9[%c0_26, %c0_27], %46 {strides = array<i32>} : memref<8x128xf32, #tpu.memory_space<vmem>>, vector<8x128xf32>,
    %c7_i32 = arith.constant 7 : i32
    %48 = arith.cmpi eq, %arg1, %c7_i32 : i32
    %49 = arith.extui %48 : i1 to i32
    %c0_i32_28 = arith.constant 0 : i32
    %50 = arith.cmpi ne, %49, %c0_i32_28 : i32
    scf.if %50 {
      %c0_29 = arith.constant 0 : index
      %c0_30 = arith.constant 0 : index
      %51 = vector.load %arg9[%c0_29, %c0_30] : memref<8x128xf32, #tpu.memory_space<vmem>>, vector<8x128xf32>
      %c0_31 = arith.constant 0 : index
      %c0_32 = arith.constant 0 : index
      %52 = vector.load %arg7[%c0_31, %c0_32] : memref<1x128xf32, #tpu.memory_space<vmem>>, vector<1x128xf32>
      %53 = vector.broadcast %52 : vector<1x128xf32> to vector<8x128xf32>
      %54 = arith.addf %51, %53 : vector<8x128xf32>
      %c0_33 = arith.constant 0 : index
      %c0_34 = arith.constant 0 : index
      %c0_35 = arith.constant 0 : index
      %55 = vector.load %arg8[%c0_33, %c0_34, %c0_35] : memref<1x8x128xf32, #tpu.memory_space<vmem>>, vector<1x8x128xf32>
      %56 = vector.shape_cast %55 : vector<1x8x128xf32> to vector<8x128xf32>
      %57 = vector.shape_cast %54 : vector<8x128xf32> to vector<1x8x128xf32>
      tpu.vector_store %arg8[%c0_33, %c0_34, %c0_35], %57 {strides = array<i32>} : memref<1x8x128xf32, #tpu.memory_space<vmem>>, vector<1x8x128xf32>,
    } else {
    }
    return
  }
  func.func @transform_0(%arg0: i32, %arg1: i32) -> (i32, i32, i32) {
    %c0_i32 = arith.constant 0 : i32
    %c0_i32_0 = arith.constant 0 : i32
    %c0_i32_1 = arith.constant 0 : i32
    return %arg0, %c0_i32, %c0_i32_0 : i32, i32, i32
  }
  func.func @transform_1(%arg0: i32, %arg1: i32) -> (i32, i32, i32) {
    %c0_i32 = arith.constant 0 : i32
    %c0_i32_0 = arith.constant 0 : i32
    %c0_i32_1 = arith.constant 0 : i32
    return %arg1, %c0_i32, %c0_i32_0 : i32, i32, i32
  }
  func.func @transform_2(%arg0: i32, %arg1: i32) -> (i32, i32, i32) {
    %c0_i32 = arith.constant 0 : i32
    %c0_i32_0 = arith.constant 0 : i32
    %c0_i32_1 = arith.constant 0 : i32
    return %arg1, %c0_i32, %c0_i32_0 : i32, i32, i32
  }
  func.func @transform_3(%arg0: i32, %arg1: i32) -> (i32, i32, i32) {
    %c0_i32 = arith.constant 0 : i32
    %c0_i32_0 = arith.constant 0 : i32
    %c0_i32_1 = arith.constant 0 : i32
    return %arg1, %c0_i32, %c0_i32_0 : i32, i32, i32
  }
  func.func @transform_4(%arg0: i32, %arg1: i32) -> (i32, i32, i32) {
    %c0_i32 = arith.constant 0 : i32
    %c0_i32_0 = arith.constant 0 : i32
    %c0_i32_1 = arith.constant 0 : i32
    return %arg1, %c0_i32, %c0_i32_0 : i32, i32, i32
  }
  func.func @transform_5(%arg0: i32, %arg1: i32) -> (i32, i32) {
    %c0_i32 = arith.constant 0 : i32
    %c0_i32_0 = arith.constant 0 : i32
    %c0_i32_1 = arith.constant 0 : i32
    return %c0_i32, %c0_i32_0 : i32, i32
  }
  func.func @transform_6(%arg0: i32, %arg1: i32) -> (i32, i32, i32) {
    %c0_i32 = arith.constant 0 : i32
    %c0_i32_0 = arith.constant 0 : i32
    %c0_i32_1 = arith.constant 0 : i32
    return %arg0, %c0_i32, %c0_i32_0 : i32, i32, i32
  }
}

</mosaic_0001>

<bundles_post_ra>
// kernel: tpu_custom_call.1
= control target key start
LH: loop header
LB: loop body
LE: loop exit
PB: predicated region body
PF: predicated region fallthrough
CT: control target
= control target key end

     0   :  { %s1472_s0 = inlined_call_operand.vmem [shape: f32[2,8,128], index: 0, kind: input, shape index: {}]   ;;  %s1473_s1 = inlined_call_operand.vmem [shape: f32[8,128,16], index: 1, kind: input, shape index: {}]   ;;  %s1474_s2 = inlined_call_operand.vmem [shape: f32[8,128,16], index: 2, kind: input, shape index: {}]   ;;  %s1475_s3 = inlined_call_operand.vmem [shape: f32[8,128,16], index: 3, kind: input, shape index: {}]   ;;  %s1476_s4 = inlined_call_operand.vmem [shape: f32[8,16,128], index: 4, kind: input, shape index: {}]   ;;  %s1477_s5 = inlined_call_operand.vmem [shape: f32[1,128], index: 5, kind: input, shape index: {}]   ;;  %s1478_s6 = inlined_call_operand.hbm [shape: f32[2,8,128], index: 6, kind: output, shape index: {}]  }
   0x1   :  { %1484 = sst [smem:[#allocation12_spill]] %s1472_s0 }
   0x2   :  { %11 = vsyncpa [#allocation4], 0 }
   0x3   :  { %13 = vsyncpa [#allocation4 + $0x1], 0  ;;  %s1205_s21 = smov 0   ;;  %s1207_s22 = smov 0  }
   0x4   :  { %s1209_s23 = smov 0   ;;  %s1211_s24 = smov 0  }
   0x5   :  { %s1213_s25 = smov 0   ;;  %s1215_s26 = smov 0  }
   0x6   :  { %s1217_s27 = smov 0   ;;  %s1219_s28 = smov 0  }
   0x7 LB: > { %1485 = sst [smem:[#allocation6_spill]] %s1144_s23  ;;  %s852_s29 = sadd.s32 4294967295, %s1164_s28   ;;  %s1164_s28 = sphi %s1219_s28, %s19_s28   ;;  %s1160_s27 = sphi %s1217_s27, %s1500_s27   ;;  %s1156_s26 = sphi %s1215_s26, %s1503_s26   ;;  %s1152_s25 = sphi %s1213_s25, %s1498_s25   ;;  %s1148_s24 = sphi %s1211_s24, %s1497_s24   ;;  %s1144_s23 = sphi %s1209_s23, %s1496_s23   ;;  %s1140_s22 = sphi %s1207_s22, %s1502_s22   ;;  %s1136_s21 = sphi %s1205_s21, %s1501_s21  }
   0x8   : > { %1486 = sst [smem:[#allocation7_spill]] %s1156_s26  ;;  %s853_s30 = sadd.s32 4294967294, %s1164_s28  }
   0x9   : > { %1487 = sst [smem:[#allocation8_spill]] %s1160_s27  ;;  %s28_s7 = sadd.s32 1, %s1156_s26 }
   0xa   : > { %p29_p0 = scmp.ge.s32.totalorder %s28_s7, 8  ;;  %s31_s8 = sadd.s32 1, %s1160_s27 }
   0xb   : > { %p199_p1 = scmp.ne.s32.totalorder %s1144_s23, %s1140_s22  ;;  %p200_p2 = scmp.eq.s32.totalorder %s852_s29, 15 }
   0xc   : > { %s1505_s7 = smov (%p29_p0, %s28_s7), 0  ;;  %s1507_s8 = smov (!%p29_p0, %s31_s8), %s1160_s27 }
   0xd   : > { %1488 = sst [smem:[#allocation9_spill]] %s1505_s7  ;;  %p1254_p3 = por %p200_p2, %p199_p1 }
   0xe   : > { %p205_p4 = scmp.ne.s32.totalorder %s1140_s22, %s1136_s21  ;;  %p33_p5 = scmp.ge.s32.totalorder %s1507_s8, 2 }
   0xf   : > { %p206_p6 = scmp.eq.s32.totalorder %s853_s30, 15  ;;  %p856_p7 = scmp.ge.s32.totalorder %s1164_s28, 1 }
  0x10   : > { %p266_p8 = scmp.lt.s32.totalorder %s1164_s28, 17  ;;  %s1509_s8 = smov (%p33_p5, %s1507_s8), 0 }
  0x11   : > { %1490 = sst [smem:[#allocation10_spill]] %s1509_s8  ;;  %p1264_p9 = por %p206_p6, %p205_p4 }
  0x12   : > { %p267_p10 = pnand %p856_p7, %p266_p8  ;;  %s186_s11 = ssub.s32 %s1160_s27, %s1509_s8 }
  0x13   : > { %s189_s12 = sadd.s32 1, %s1144_s23  ;;  %p187_p11 = scmp.eq.s32.totalorder %s186_s11, 0 }
  0x14   : > { %270 = sbr.rel (%p267_p10) target bundleno = 1287 (0x507), region = 44  ;;  %s1481_s14 = sand.u32 (!%p267_p10), 1, %s1140_s22  }
  0x15   : > { %s1272_s13 = scalar_select %p187_p11, %s1144_s23, %s189_s12  }
  0x16   : > { %p315_p12 = scmp.lt.s32.totalorder (!%p267_p10), %s1152_s25, 1  ;;  %s1278_s15 = sshll.u32 (!%p267_p10), %s1481_s14, 3 }
  0x17   : > { %1492 = sst [smem:[#allocation11_spill]] %s1272_s13  ;;  %p319_p13 = scmp.lt.s32.totalorder (!%p267_p10), %s1148_s24, 7 }
  0x18   : > { %s1493_s0 = sld [smem:[#allocation12_spill]] (!%p267_p10)  ;;  %p867_p0 = scmp.ne.s32.totalorder (!%p267_p10), %s1148_s24, 0 }
  0x1b   : > { %s316_s16 = scalar_select %p315_p12, %s1152_s25, 1 }
  0x1c   : > { %s320_s17 = scalar_select %p319_p13, %s1148_s24, 7 }
  0x1d   : > { %s858_s18 = sshll.u32 %s316_s16, 3  ;;  %343 = sbr.rel (%p867_p0) target bundleno = 36 (0x24), region = 48  ;;  %v1166_v0 = vmov (!%p867_p0), 0.0  }
  0x1e   : > { %s1286_s29 = scalar_lea.vmem %s1493_s0, %s858_s18  ;;  %s877_s30 = sshll.u32 %s320_s17, 7  ;;  %344 = vst [vmem:[#allocation2] sm:$0xff] (!%p867_p0), %v1166_v0 }
  0x1f   : > { %s1291_s8 = scalar_lea.vmem %s1473_s1, %s877_s30  ;;  %s1296_s14 = scalar_lea.vmem %s1474_s2, %s877_s30 }
  0x20   : > { %s1301_s16 = scalar_lea.vmem %s1475_s3, %s877_s30  ;;  %s880_s23 = sshll.u32 %s320_s17, 4 }
  0x21   : > { %s1306_s20 = scalar_lea.vmem %s1476_s4, %s880_s23  ;;  %s314_s0 = scalar_lea.vmem [#allocation3], %s1278_s15 }
  0x24 PF: > { %v411_v1 = vld [vmem:[%s1296_s14] sm:$0xff]  ;;  %v412_v2 = vld [vmem:[%s1296_s14 + $0x8] sm:$0xff]  ;;  %v413_v3 = vld [vmem:[%s1296_s14 + $0x10] sm:$0xff]  ;;  %v1167_v4 = vmov 0.0   ;;  %vm1168_vm0 = vmmov 0   ;;  %vm541_vm1 = vcmask 130048  }
  0x25   : > { %934 = vmatprep.subr.bf16.mxu1 %v1167_v4  ;;  %v427_v5 = vpack.c.bf16 %v412_v2, %v411_v1  ;;  %v414_v6 = vld [vmem:[%s1296_s14 + $0x18] sm:$0xff]  ;;  %914 = vmatprep.subr.bf16.mxu0 %v1167_v4  ;;  %v347_v7 = vld [vmem:[%s1291_s8] sm:$0xff]  ;;  %v348_v8 = vld [vmem:[%s1291_s8 + $0x8] sm:$0xff]  ;;  %vm595_vm3 = vcmask 64512   ;;  %vm612_vm4 = vcmask 1043456   ;;  %p871_p1 = scmp.ne.s32.totalorder %s1148_s24, 7 }
  0x26   : > { %v363_v9 = vpack.c.bf16 %v348_v8, %v347_v7  ;;  %v349_v10 = vld [vmem:[%s1291_s8 + $0x10] sm:$0xff]  ;;  %950 = vmatprep.mubr.msk.bf16.mxu1 %vm1168_vm0, %v1167_v4  ;;  %930 = vmatprep.mubr.msk.bf16.mxu0 %vm1168_vm0, %v1167_v4  ;;  %v428_v11 = vpack.c.bf16 %v414_v6, %v413_v3  ;;  %v350_v12 = vld [vmem:[%s1291_s8 + $0x18] sm:$0xff]  ;;  %v415_v13 = vld [vmem:[%s1296_s14 + $0x20] sm:$0xff] }
  0x27   : > { %935 = vmatpush3.bf16.msra.mxu1 %v427_v5  ;;  %v416_v14 = vld [vmem:[%s1296_s14 + $0x28] sm:$0xff]  ;;  %v364_v15 = vpack.c.bf16 %v350_v12, %v349_v10  ;;  %v351_v16 = vld [vmem:[%s1291_s8 + $0x20] sm:$0xff]  ;;  %v417_v19 = vld [vmem:[%s1296_s14 + $0x30] sm:$0xff] }
  0x28   : > { %936 = vmatprep.subr.bf16.mxu1 %v1167_v4  ;;  %915 = vmatpush3.bf16.msra.mxu0 %v363_v9  ;;  %v352_v17 = vld [vmem:[%s1291_s8 + $0x28] sm:$0xff]  ;;  %v429_v18 = vpack.c.bf16 %v416_v14, %v415_v13  ;;  %v418_v20 = vld [vmem:[%s1296_s14 + $0x38] sm:$0xff]  ;;  %v353_v22 = vld [vmem:[%s1291_s8 + $0x30] sm:$0xff] }
  0x29   : > { %916 = vmatprep.subr.bf16.mxu0 %v1167_v4  ;;  %v365_v21 = vpack.c.bf16 %v352_v17, %v351_v16  ;;  %v354_v23 = vld [vmem:[%s1291_s8 + $0x38] sm:$0xff]  ;;  %v430_v24 = vpack.c.bf16 %v418_v20, %v417_v19  ;;  %v419_v25 = vld [vmem:[%s1296_s14 + $0x40] sm:$0xff]  ;;  %v420_v26 = vld [vmem:[%s1296_s14 + $0x48] sm:$0xff] }
  0x2a   : > { %v366_v27 = vpack.c.bf16 %v354_v23, %v353_v22  ;;  %v355_v28 = vld [vmem:[%s1291_s8 + $0x40] sm:$0xff]  ;;  %v356_v29 = vld [vmem:[%s1291_s8 + $0x48] sm:$0xff]  ;;  %v431_v30 = vpack.c.bf16 %v420_v26, %v419_v25  ;;  %v421_v31 = vld [vmem:[%s1296_s14 + $0x50] sm:$0xff] }
  0x2b   : > { %937 = vmatpush3.bf16.msra.mxu1 %v428_v11  ;;  %v422_v32 = vld [vmem:[%s1296_s14 + $0x58] sm:$0xff]  ;;  %v367_v33 = vpack.c.bf16 %v356_v29, %v355_v28  ;;  %v357_v34 = vld [vmem:[%s1291_s8 + $0x50] sm:$0xff]  ;;  %v423_v37 = vld [vmem:[%s1296_s14 + $0x60] sm:$0xff] }
  0x2c   : > { %938 = vmatprep.subr.bf16.mxu1 %v1167_v4  ;;  %917 = vmatpush3.bf16.msra.mxu0 %v364_v15  ;;  %v358_v35 = vld [vmem:[%s1291_s8 + $0x58] sm:$0xff]  ;;  %v432_v36 = vpack.c.bf16 %v422_v32, %v421_v31  ;;  %v424_v38 = vld [vmem:[%s1296_s14 + $0x68] sm:$0xff]  ;;  %v359_v40 = vld [vmem:[%s1291_s8 + $0x60] sm:$0xff] }
  0x2d   : > { %918 = vmatprep.subr.bf16.mxu0 %v1167_v4  ;;  %v368_v39 = vpack.c.bf16 %v358_v35, %v357_v34  ;;  %v360_v41 = vld [vmem:[%s1291_s8 + $0x68] sm:$0xff]  ;;  %v433_v42 = vpack.c.bf16 %v424_v38, %v423_v37  ;;  %v425_v43 = vld [vmem:[%s1296_s14 + $0x70] sm:$0xff]  ;;  %v426_v44 = vld [vmem:[%s1296_s14 + $0x78] sm:$0xff] }
  0x2e   : > { %v369_v45 = vpack.c.bf16 %v360_v41, %v359_v40  ;;  %v361_v46 = vld [vmem:[%s1291_s8 + $0x70] sm:$0xff]  ;;  %v362_v47 = vld [vmem:[%s1291_s8 + $0x78] sm:$0xff]  ;;  %v434_v48 = vpack.c.bf16 %v426_v44, %v425_v43  ;;  %v345_v49 = vld [vmem:[%s1286_s29] sm:$0xff] }
  0x2f   : > { %939 = vmatpush3.bf16.msra.mxu1 %v429_v18  ;;  %v370_v50 = vpack.c.bf16 %v362_v47, %v361_v46  ;;  %v1363_v51 = vpack.c.bf16 %v345_v49, %v345_v49  ;;  %v475_v63 = vld [vmem:[%s1301_s16] sm:$0xff]  ;;  %v476_v0 = vld [vmem:[%s1301_s16 + $0x8] sm:$0xff]  ;;  %v477_v1 = vld [vmem:[%s1301_s16 + $0x10] sm:$0xff] }
  0x30   : > { %940 = vmatprep.subr.bf16.mxu1 %v1167_v4  ;;  %919 = vmatpush3.bf16.msra.mxu0 %v365_v21  ;;  %v491_v2 = vpack.c.bf16 %v476_v0, %v475_v63  ;;  %v478_v3 = vld [vmem:[%s1301_s16 + $0x18] sm:$0xff]  ;;  %v479_v6 = vld [vmem:[%s1301_s16 + $0x20] sm:$0xff]  ;;  %v480_v7 = vld [vmem:[%s1301_s16 + $0x28] sm:$0xff] }
  0x31   : > { %920 = vmatprep.subr.bf16.mxu0 %v1167_v4  ;;  %v492_v5 = vpack.c.bf16 %v478_v3, %v477_v1  ;;  %v493_v8 = vpack.c.bf16 %v480_v7, %v479_v6  ;;  %v481_v9 = vld [vmem:[%s1301_s16 + $0x30] sm:$0xff]  ;;  %v482_v10 = vld [vmem:[%s1301_s16 + $0x38] sm:$0xff]  ;;  %v483_v12 = vld [vmem:[%s1301_s16 + $0x40] sm:$0xff] }
  0x32   : > { %v494_v11 = vpack.c.bf16 %v482_v10, %v481_v9  ;;  %v484_v13 = vld [vmem:[%s1301_s16 + $0x48] sm:$0xff]  ;;  %v485_v15 = vld [vmem:[%s1301_s16 + $0x50] sm:$0xff]  ;;  %v486_v16 = vld [vmem:[%s1301_s16 + $0x58] sm:$0xff] }
  0x33   : > { %941 = vmatpush3.bf16.msra.mxu1 %v430_v24  ;;  %v495_v14 = vpack.c.bf16 %v484_v13, %v483_v12  ;;  %v496_v17 = vpack.c.bf16 %v486_v16, %v485_v15  ;;  %v487_v18 = vld [vmem:[%s1301_s16 + $0x60] sm:$0xff]  ;;  %v488_v19 = vld [vmem:[%s1301_s16 + $0x68] sm:$0xff]  ;;  %v489_v21 = vld [vmem:[%s1301_s16 + $0x70] sm:$0xff]  ;;  %v589_v24 = vlaneseq }
  0x34   : > { %942 = vmatprep.subr.bf16.mxu1 %v1167_v4  ;;  %921 = vmatpush3.bf16.msra.mxu0 %v366_v27  ;;  %v497_v20 = vpack.c.bf16 %v488_v19, %v487_v18  ;;  %v490_v22 = vld [vmem:[%s1301_s16 + $0x78] sm:$0xff]  ;;  %v658_v46 = vld [vmem:[%s1306_s20] sm:$0xff]  ;;  %v659_v47 = vld [vmem:[%s1306_s20 + $0x8] sm:$0xff] }
  0x35   : > { %922 = vmatprep.subr.bf16.mxu0 %v1167_v4  ;;  %v498_v23 = vpack.c.bf16 %v490_v22, %v489_v21  ;;  %v590_v25 = vshrl.u32 %v589_v24, 7  ;;  %v592_v26 = vand.u32 127, %v589_v24 }
  0x37   : > { %943 = vmatpush3.bf16.msra.mxu1 %v431_v30  ;;  %vm593_vm2 = vcmp.le.s32.totalorder %v592_v26, %v590_v25 }
  0x38   : > { %944 = vmatprep.subr.bf16.mxu1 %v1167_v4  ;;  %923 = vmatpush3.bf16.msra.mxu0 %v367_v33 }
  0x39   : > { %924 = vmatprep.subr.bf16.mxu0 %v1167_v4 }
  0x3b   : > { %945 = vmatpush3.bf16.msra.mxu1 %v432_v36 }
  0x3c   : > { %946 = vmatprep.subr.bf16.mxu1 %v1167_v4  ;;  %925 = vmatpush3.bf16.msra.mxu0 %v368_v39 }
  0x3d   : > { %926 = vmatprep.subr.bf16.mxu0 %v1167_v4 }
  0x3f   : > { %947 = vmatpush3.bf16.msra.mxu1 %v433_v42 }
  0x40   : > { %948 = vmatprep.subr.bf16.mxu1 %v1167_v4  ;;  %927 = vmatpush3.bf16.msra.mxu0 %v369_v45 }
  0x41   : > { %928 = vmatprep.subr.bf16.mxu0 %v1167_v4 }
  0x43   : > { %949 = vmatpush3.bf16.msra.mxu1 %v434_v48 }
  0x44   : > { %929 = vmatpush3.bf16.msra.mxu0 %v370_v50  ;;  %974 = vmatprep.subr.bf16.mxu1 %v1167_v4  ;;  %v660_v50 = vpack.c.bf16 %v659_v47, %v658_v46 }
  0x45   : > { %954 = vmatprep.subr.bf16.mxu0 %v1167_v4 }
  0x46   : > { %951 = vmatmul.mubr.bf16.vlgmr.msra.gmra.mrb[0].mxu1 %v1363_v51 }
  0x47   : > { %931 = vmatmul.mubr.bf16.vlgmr.msra.gmra.mrb[0].mxu0 %v1363_v51  ;;  %976 = vmatprep.mubr.msk.bf16.mxu1 %vm1168_vm0, %v1167_v4 }
  0x48   : > { %970 = vmatprep.mubr.msk.bf16.mxu0 %vm1168_vm0, %v1167_v4  ;;  %955 = vmatpush3.bf16.msra.mxu0 %v491_v2 }
  0x49   : > { %956 = vmatprep.subr.bf16.mxu0 %v1167_v4 }
  0x4c   : > { %957 = vmatpush3.bf16.msra.mxu0 %v492_v5 }
  0x4d   : > { %958 = vmatprep.subr.bf16.mxu0 %v1167_v4 }
  0x50   : > { %959 = vmatpush3.bf16.msra.mxu0 %v493_v8 }
  0x51   : > { %960 = vmatprep.subr.bf16.mxu0 %v1167_v4 }
  0x54   : > { %961 = vmatpush3.bf16.msra.mxu0 %v494_v11 }
  0x55   : > { %962 = vmatprep.subr.bf16.mxu0 %v1167_v4 }
  0x58   : > { %963 = vmatpush3.bf16.msra.mxu0 %v495_v14 }
  0x59   : > { %964 = vmatprep.subr.bf16.mxu0 %v1167_v4 }
  0x5c   : > { %965 = vmatpush3.bf16.msra.mxu0 %v496_v17 }
  0x5d   : > { %966 = vmatprep.subr.bf16.mxu0 %v1167_v4 }
  0x60   : > { %967 = vmatpush3.bf16.msra.mxu0 %v497_v20 }
  0x61   : > { %968 = vmatprep.subr.bf16.mxu0 %v1167_v4 }
  0x64   : > { %969 = vmatpush3.bf16.msra.mxu0 %v498_v23 }
  0x67   : > { %971 = vmatmul.mubr.bf16.vlgmr.msra.gmra.mrb[4].mxu0 %v1363_v51 }
 0x119   : > { %v469_v52 = vpop.f32.mrb[0].mxu1 }
 0x11a   : > { %v540_v53 = vpack.c.bf16 %v469_v52, %v469_v52  ;;  %v952_v54 = vpop.f32.mrb[1].mxu1  ;;  %v405_v55 = vpop.f32.mrb[0].mxu0 }
 0x11b   : > { %v472_v56 = vpop.f32.mrb[2].mxu1  ;;  %v932_v57 = vpop.f32.mrb[1].mxu0  ;;  %v539_v62 = vpack.c.bf16 %v405_v55, %v405_v55 }
 0x11c   : > { %v546_v58 = vsel %vm541_vm1, %v540_v53, 0  ;;  %v953_v59 = vpop.f32.mrb[3].mxu1  ;;  %v408_v60 = vpop.f32.mrb[2].mxu0  ;;  %v656_v57 = vld [vmem:[#allocation2] sm:$0xff] }
 0x11d   : > { %975 = vmatpush3.bf16.xpose.msra.mxu1 %v546_v58  ;;  %v933_v61 = vpop.f32.mrb[3].mxu0 }
 0x11e   : > { %980 = vmatprep.subr.bf16.mxu1 %v1167_v4 }
 0x124   : > { %977 = vmatmul.mubr.msk.bf16.vlgmr.msra.gmra.mrb[4].mxu1 %vm541_vm1, %v539_v62 }
 0x125   : > { %982 = vmatprep.mubr.msk.bf16.mxu1 %vm1168_vm0, %v1167_v4 }
 0x13a   : > { %v533_v39 = vpop.f32.mrb[4].mxu0 }
 0x13b   : > { %v972_v40 = vpop.f32.mrb[5].mxu0  ;;  %v608_v43 = vpack.c.bf16 %v533_v39, %v533_v39 }
 0x13c   : > { %v536_v41 = vpop.f32.mrb[6].mxu0 }
 0x13d   : > { %v973_v42 = vpop.f32.mrb[7].mxu0  ;;  %v614_v44 = vsel %vm612_vm4, %v608_v43, 0 }
 0x13e   : > { %981 = vmatpush3.bf16.msra.mxu1 %v614_v44 }
 0x13f   : > { %986 = vmatprep.subr.bf16.mxu1 %v1167_v4 }
 0x1f7   : > { %v582_v27 = vpop.f32.mrb[4].mxu1 }
 0x1f8   : > { %v588_v28 = vmul.f32 0.088388346, %v582_v27  ;;  %v978_v29 = vpop.f32.mrb[5].mxu1 }
 0x1f9   : > { %v585_v30 = vpop.f32.mrb[6].mxu1 }
 0x1fa   : > { %v979_v31 = vpop.f32.mrb[7].mxu1  ;;  %v594_v32 = vsel %vm593_vm2, %v588_v28, -inf }
 0x1fb   : > { %v596_v33 = vsel %vm595_vm3, %v594_v32, -inf }
 0x1fc   : > { %597 = vmax.xlane.f32.xlu0 %v596_v33 }
 0x289   : > { %v598_v34 = vpop.xlane.xlu0 %597 }
 0x28a   : > { %v599_v35 = vsub.f32 %v594_v32, %v598_v34 }
 0x28c   : > { %v600_v36 = vmul.f32 1.442695, %v599_v35 }
 0x28e   : > { %1066 = vpow2.f32 %v600_v36 }
 0x298   : > { %v1067_v37 = vpop.eup %1066 }
 0x299   : > { %v602_v38 = vsel %vm595_vm3, %v1067_v37, 0.0 }
 0x29a   : > { %603 = vadd.xlane.f32.xlu0 %v602_v38 }
 0x327   : > { %v604_v45 = vpop.xlane.xlu0 %603 }
 0x328   : > { %1068 = vrcp.f32 %v604_v45 }
 0x332   : > { %v1069_v48 = vpop.eup %1068 }
 0x333   : > { %v606_v49 = vmul.f32 %v1069_v48, %v1067_v37 }
 0x335   : > { %v607_v51 = vpack.c.bf16 %v606_v49, %v606_v49 }
 0x337   : > { %983 = vmatmul.mubr.msk.bf16.vlgmr.msra.gmra.mrb[8].mxu1 %vm595_vm3, %v607_v51 }
 0x338   : > { %987 = vmatpush3.bf16.msra.mxu1 %v660_v50  ;;  %988 = vmatprep.mubr.msk.bf16.mxu1 %vm1168_vm0, %v1167_v4  ;;  %v872_v4 = vld [vmem:[%s1477_s5] ss:$0 sm:$0xff] (!%p871_p1) }
 0x40a   : > { %v650_v52 = vpop.f32.mrb[8].mxu1 }
 0x40b   : > { %v657_v53 = vpack.c.bf16 %v650_v52, %v650_v52  ;;  %v984_v54 = vpop.f32.mrb[9].mxu1 }
 0x40c   : > { %v653_v55 = vpop.f32.mrb[10].mxu1 }
 0x40d   : > { %v985_v56 = vpop.f32.mrb[11].mxu1  ;;  %989 = vmatmul.mubr.msk.bf16.vlgmr.msra.gmra.mrb[12].mxu1 %vm541_vm1, %v657_v53 }
 0x4dd   : > { %709 = sbr.rel (%p871_p1) target bundleno = 1262 (0x4ee), region = 52 }
 0x4e0   : > { %v698_v58 = vpop.f32.mrb[12].mxu1 }
 0x4e1   : > { %v704_v59 = vadd.f32 %v698_v58, %v656_v57  ;;  %v990_v60 = vpop.f32.mrb[13].mxu1 }
 0x4e2   : > { %v701_v61 = vpop.f32.mrb[14].mxu1 }
 0x4e3   : > { %705 = vst [vmem:[#allocation2] sm:$0xff] %v704_v59  ;;  %v991_v62 = vpop.f32.mrb[15].mxu1 }
 0x4ea   : > { %v710_v63 = vld [vmem:[#allocation2] sm:$0xff] }
 0x4eb   : > { %v718_v0 = vadd.f32 %v872_v4, %v710_v63 }
 0x4ed   : > { %719 = vst [vmem:[%s314_s0] sm:$0xff] %v718_v0 }
 0x4ee PF: > { %s874_s27 = sshll.u32 %s1152_s25, 7  ;;  %s734_s13 = sshll.u32 %s314_s0, 4  ;;  %s735_s13 = int_to_ptr.vmem [resolvable:$true] %s734_s13 }
 0x4ef   : > { %s1421_s24 = scalar_lea.hbm %s1478_s6, %s874_s27  ;;  %s1494_s14 = sand.u32 1, %s1140_s22  }
 0x4f0   : > { %s721_s17 = scalar_lea.sflag [#allocation4], %s1494_s14  ;;  %s1070_s29 = scalar_lea.vmem %s735_s13, 128 }
 0x4f1   : > { %p1071_p2 = scmp.ne.s32.totalorder %s735_s13, %s1070_s29  ;;  %s1169_s30 = smov [#allocation3]  }
 0x4f2   : > { %s1074_s11 = sshll.u32 %s1169_s30, 4  ;;  %s1075_s11 = int_to_ptr.vmem [resolvable:$false] %s1074_s11 }
 0x4f3   : > { %p1072_p4 = pnand %p1071_p2, %p1254_p3  ;;  %s1076_s12 = scalar_lea.vmem %s1075_s11, 256 }
 0x4f4   : > { %p1077_p6 = scmp.lt.s32.totalorder %s735_s13, %s1075_s11  ;;  %p1078_p7 = scmp.lt.s32.totalorder %s1076_s12, %s1070_s29 }
 0x4f5   : > { %p1073_p5 = pneg %p1072_p4 }
 0x4f6   : > { %p1079_p8 = por %p1078_p7, %p1077_p6 }
 0x4f8   : > { %p1080_p10 = pnand %p1079_p8, %p1073_p5 }
 0x4fa   : > { %1083 = shalt.err (!%p1080_p10)
}
 0x4fb   : > { %s1084_s0 = scalar_lea.hbm %s1421_s24, 128  ;;  %s1088_s16 = scalar_lea.hbm %s1478_s6, 256 }
 0x4fc   : > { %p1085_p11 = scmp.ne.s32.totalorder %s1421_s24, %s1084_s0  ;;  %p1089_p0 = scmp.lt.u32.totalorder %s1421_s24, %s1478_s6 }
 0x4fd   : > { %p1090_p1 = scmp.lt.u32.totalorder %s1088_s16, %s1084_s0  ;;  %p1092_p4 = scmp.lt.u32.totalorder %s1084_s0, %s1421_s24 }
 0x4fe   : > { %p1086_p12 = pnand %p1085_p11, %p1254_p3 }
 0x4ff   : > { %p1091_p2 = por %p1090_p1, %p1089_p0 }
 0x500   : > { %p1087_p13 = pneg %p1086_p12 }
 0x501   : > { %p1093_p5 = por %p1092_p4, %p1091_p2 }
 0x503   : > { %p1094_p6 = pnand %p1093_p5, %p1087_p13 }
 0x505   : > { %1097 = shalt.err (!%p1094_p6)
}
 0x506   : > { %992 = dma.vmem_to_hbm [thread:$0]  (%p1254_p3), %s735_s13, 128, %s1421_s24, %s721_s17  }
 0x507 PF: > { %p998_p7 = scmp.ge.s32.totalorder %s1164_s28, 2  ;;  %s746_s20 = sand.u32 1, %s1136_s21  }
 0x508   : > { %s747_s23 = scalar_lea.sflag [#allocation4], %s746_s20 }
 0x509   : > { %p995_p8 = pnand %p998_p7, %p1264_p9 }
 0x50b   : > { %1131 = dma.done.wait (!%p995_p8), %s747_s23, 128  }
 0x50c   : > { %1133 = vsyncadd (!%p995_p8), %s747_s23, 4294967168  ;;  %s19_s28 = sadd.s32 1, %s1164_s28   ;;  %s1495_s26 = sld [smem:[#allocation6_spill]] }
 0x50d   : > { %p16_p10 = scmp.ge.s32.totalorder %s19_s28, 18   ;;  %s1496_s23 = sld [smem:[#allocation11_spill]] }
 0x50e   : > { %s1497_s24 = sld [smem:[#allocation7_spill]]  ;;  %s1498_s25 = sld [smem:[#allocation8_spill]] }
 0x50f   : > { %s1499_s9 = sld [smem:[#allocation9_spill]]  ;;  %s1500_s27 = sld [smem:[#allocation10_spill]] }
 0x510   : > { %s1501_s21 = smov %s1140_s22  ;;  %18 = sbr.rel (!%p16_p10) target bundleno = 7 (0x7), region = 99 }
 0x512   : > { %s1502_s22 = smov %s1495_s26 }
 0x515   : > { %s1503_s26 = smov %s1499_s9 }
 0x517   :  { %752 = vsyncpa [#allocation4], 1 }
 0x518   :  { %754 = vsyncpa [#allocation4 + $0x1], 1 }

</bundles_post_ra>
